<compile_context>
chip_gen: v5e
topology: v5e:2x2
jax: 0.10.0
libtpu: 0.0.40
codegen_flags: <defaults>
</compile_context>

<pallas_src>
import jax
import jax.numpy as jnp
from jax.experimental import pallas as pl
from jax.experimental.pallas import tpu as pltpu


def _round_up(x, m):
    return ((x + m - 1) // m) * m


def ffn_kernel(x_ref, w1_ref, b1_ref, w2_ref, b2_ref, o_ref):
    # x_ref:  (C_in,  TL)    activation tile, lane axis = flattened pixels
    # w1_ref: (C_hid, C_in)  BN1-folded weights (compute dtype, e.g. bf16)
    # b1_ref: (C_hid, 1)     BN1-folded bias (f32)
    # w2_ref: (C_out, C_hid) BN2-folded weights
    # b2_ref: (C_out, 1)     BN2-folded bias (f32)
    # o_ref:  (C_out, TL)
    x = x_ref[...]                                   # native dtype, no blanket upcast
    h = jnp.dot(w1_ref[...], x, preferred_element_type=jnp.float32) + b1_ref[...]
    h = jnp.maximum(h, 0.0)                          # relu in f32
    h = h.astype(w2_ref.dtype)                       # back to compute dtype for 2nd MXU pass
    y = jnp.dot(w2_ref[...], h, preferred_element_type=jnp.float32) + b2_ref[...]
    # residual add in f32 (out_features == in_features), cast once on store
    o_ref[...] = (y + x.astype(jnp.float32)).astype(o_ref.dtype)


def ffn_pallas(x3d, w1, b1, w2, b2, *, tl=512, out_dtype=None):
    """x3d: (N, C_in, L) slab with L = H*W on the lane axis. Returns (N, C_out, L)."""
    N, C_in, L = x3d.shape
    C_hid = w1.shape[0]
    C_out = w2.shape[0]
    assert C_out == C_in, "FFN residual requires out_features == in_features"
    out_dtype = out_dtype or x3d.dtype

    # Lane tile: multiple of 128, no bigger than the (padded) spatial extent.
    tl = max(128, (tl // 128) * 128)
    L_pad = _round_up(L, 128)
    tl_eff = min(tl, L_pad)
    L_pad = _round_up(L_pad, tl_eff)
    if L_pad != L:
        # Columns are independent (1x1 conv) -> zero padding is sliced off below.
        x3d = jnp.pad(x3d, ((0, 0), (0, 0), (0, L_pad - L)))

    grid = (N, L_pad // tl_eff)

    # VMEM budget: double-buffered in/out activation tiles + resident weights.
    act_b = jnp.dtype(x3d.dtype).itemsize
    out_b = jnp.dtype(out_dtype).itemsize
    w_b = jnp.dtype(w1.dtype).itemsize
    budget = (2 * tl_eff * (C_in * act_b + C_out * out_b)
              + 2 * w_b * (C_in * C_hid + C_hid * C_out)
              + 2 * 4 * (C_hid + C_out))
    vmem_limit = int(min(max(2 * budget + (8 << 20), 32 << 20), 48 << 20))

    out = pl.pallas_call(
        ffn_kernel,
        out_shape=jax.ShapeDtypeStruct((N, C_out, L_pad), out_dtype),
        grid_spec=pltpu.PrefetchScalarGridSpec(
            num_scalar_prefetch=0,
            grid=grid,
            in_specs=[
                pl.BlockSpec((None, C_in, tl_eff), lambda n, t: (n, 0, t)),
                pl.BlockSpec((C_hid, C_in), lambda n, t: (0, 0)),
                pl.BlockSpec((C_hid, 1), lambda n, t: (0, 0)),
                pl.BlockSpec((C_out, C_hid), lambda n, t: (0, 0)),
                pl.BlockSpec((C_out, 1), lambda n, t: (0, 0)),
            ],
            out_specs=pl.BlockSpec((None, C_out, tl_eff), lambda n, t: (n, 0, t)),
        ),
        compiler_params=pltpu.CompilerParams(
            dimension_semantics=("parallel", "parallel"),
            vmem_limit_bytes=vmem_limit,
        ),
    )(x3d, w1, b1, w2, b2)

    return out[:, :, :L] if L_pad != L else out


def fold_bn(conv_w, conv_b, gamma, beta, mean, var, eps=1e-5, w_dtype=jnp.float32):
    """Fold BatchNorm2d (eval) into a 1x1 conv.

    conv_w: (C_out, C_in) — torch Conv2d weight squeezed of its 1x1 spatial dims.
    Returns W (C_out, C_in) in compute dtype for W @ X, bias (C_out, 1) in f32."""
    scale = gamma / jnp.sqrt(var + eps)                    # (C_out,)
    w_eff = (conv_w * scale[:, None]).astype(w_dtype)      # (C_out, C_in)
    b_eff = ((conv_b - mean) * scale + beta).reshape(-1, 1).astype(jnp.float32)
    return w_eff, b_eff


def ffn_forward(x_nchw, params, *, compute_dtype=jnp.bfloat16, tl=512):
    """x_nchw: (N, C, H, W) like PyTorch. Returns (N, C, H, W) in x's dtype.

    In a full channels-kept bf16 ViG pipeline the final cast would be dropped
    and the bf16 slab fed straight to the next block."""
    N, C, H, W = x_nchw.shape
    w1, b1 = fold_bn(params["fc1_w"], params["fc1_b"], params["bn1_g"],
                     params["bn1_b"], params["bn1_m"], params["bn1_v"],
                     w_dtype=compute_dtype)
    w2, b2 = fold_bn(params["fc2_w"], params["fc2_b"], params["bn2_g"],
                     params["bn2_b"], params["bn2_m"], params["bn2_v"],
                     w_dtype=compute_dtype)

    # NCHW -> (N, C, H*W): a free reshape, no transpose; lane axis = pixels.
    x3d = x_nchw.reshape(N, C, H * W).astype(compute_dtype)
    y3d = ffn_pallas(x3d, w1, b1, w2, b2, tl=tl, out_dtype=compute_dtype)
    return y3d.reshape(N, -1, H, W).astype(x_nchw.dtype)


def reference_forward(x_nchw, params, eps=1e-5):
    """Pure-JAX reference mirroring the PyTorch module (eval mode)."""
    def conv_bn(x, w, b, g, bt, m, v):
        y = jnp.einsum("nchw,oc->nohw", x, w) + b[None, :, None, None]
        s = g / jnp.sqrt(v + eps)
        return (y - m[None, :, None, None]) * s[None, :, None, None] + bt[None, :, None, None]

    shortcut = x_nchw
    h = conv_bn(x_nchw, params["fc1_w"], params["fc1_b"], params["bn1_g"],
                params["bn1_b"], params["bn1_m"], params["bn1_v"])
    h = jnp.maximum(h, 0.0)
    y = conv_bn(h, params["fc2_w"], params["fc2_b"], params["bn2_g"],
                params["bn2_b"], params["bn2_m"], params["bn2_v"])
    return y + shortcut


def make_params(key, in_features, hidden_features, out_features):
    ks = jax.random.split(key, 10)
    return {
        "fc1_w": jax.random.normal(ks[0], (hidden_features, in_features), jnp.float32) * 0.1,
        "fc1_b": jax.random.normal(ks[1], (hidden_features,), jnp.float32) * 0.1,
        "bn1_g": 1.0 + 0.1 * jax.random.normal(ks[2], (hidden_features,), jnp.float32),
        "bn1_b": 0.1 * jax.random.normal(ks[3], (hidden_features,), jnp.float32),
        "bn1_m": 0.1 * jax.random.normal(ks[4], (hidden_features,), jnp.float32),
        "bn1_v": jnp.abs(1.0 + 0.1 * jax.random.normal(ks[5], (hidden_features,), jnp.float32)),
        "fc2_w": jax.random.normal(ks[6], (out_features, hidden_features), jnp.float32) * 0.1,
        "fc2_b": jax.random.normal(ks[7], (out_features,), jnp.float32) * 0.1,
        "bn2_g": 1.0 + 0.1 * jax.random.normal(ks[8], (out_features,), jnp.float32),
        "bn2_b": 0.1 * jax.random.normal(ks[9], (out_features,), jnp.float32),
        "bn2_m": jnp.zeros((out_features,), jnp.float32),
        "bn2_v": jnp.ones((out_features,), jnp.float32),
    }


if __name__ == "__main__":
    key = jax.random.PRNGKey(0)
    kx1, kp1, kx2, kp2 = jax.random.split(key, 4)

    # Case 1: f32 compute, ViG-like 14x14 spatial (NOT a multiple of the lane
    # tile -> exercises the zero-pad path).  Tight tolerance.
    N, C, H, W = 2, 4, 14, 14
    hidden = 4 * C                      # FFN(channels, channels * 4) as in DeepGCN
    x1 = jax.random.normal(kx1, (N, C, H, W), jnp.float32)
    p1 = make_params(kp1, C, hidden, C)
    y1 = jax.block_until_ready(ffn_forward(x1, p1, compute_dtype=jnp.float32))
    y1_ref = reference_forward(x1, p1)
    assert y1.shape == (N, C, H, W)
    assert jnp.allclose(y1, y1_ref, atol=1e-4, rtol=1e-4), "f32 mismatch vs reference"

    # Case 2: bf16 operands with f32 MXU accumulation (halves HBM traffic for
    # the activation slab).  Looser tolerance per bf16 operand rounding.
    N2, C2, H2, W2 = 2, 4, 16, 16
    x2 = jax.random.normal(kx2, (N2, C2, H2, W2), jnp.float32)
    p2 = make_params(kp2, C2, 4 * C2, C2)
    y2 = jax.block_until_ready(ffn_forward(x2, p2, compute_dtype=jnp.bfloat16))
    y2_ref = reference_forward(x2, p2)
    assert y2.shape == (N2, C2, H2, W2)
    assert jnp.allclose(y2, y2_ref, atol=3e-2, rtol=3e-2), "bf16 mismatch vs reference"

    # TODO(synk): DropPath with drop_path > 0.0 (training-time stochastic depth)
    # is not implemented; the module default drop_path=0.0 == Identity.
    print("KERNEL_OK")
</pallas_src>

<mosaic_0001>
module attributes {stable_mosaic.version = 11 : i64} {
  func.func @ffn_kernel(%arg0: i32, %arg1: i32, %arg2: memref<1x4x256xf32, #tpu.memory_space<vmem>>, %arg3: memref<16x4xf32, #tpu.memory_space<vmem>>, %arg4: memref<16x1xf32, #tpu.memory_space<vmem>>, %arg5: memref<4x16xf32, #tpu.memory_space<vmem>>, %arg6: memref<4x1xf32, #tpu.memory_space<vmem>>, %arg7: memref<1x4x256xf32, #tpu.memory_space<vmem>>) attributes {dimension_semantics = [#tpu.dimension_semantics<parallel>, #tpu.dimension_semantics<parallel>], iteration_bounds = array<i64: 2, 1>, scalar_prefetch = 0 : i64, scratch_operands = 0 : i64, tpu.core_type = #tpu.core_type<tc>, window_params = [{transform_indices = @transform_0, window_bounds = array<i64: 1, 4, 256>}, {pipeline_mode = #tpu.pipeline_mode<synchronous>, transform_indices = @transform_1, window_bounds = array<i64: 16, 4>}, {pipeline_mode = #tpu.pipeline_mode<synchronous>, transform_indices = @transform_2, window_bounds = array<i64: 16, 1>}, {pipeline_mode = #tpu.pipeline_mode<synchronous>, transform_indices = @transform_3, window_bounds = array<i64: 4, 16>}, {pipeline_mode = #tpu.pipeline_mode<synchronous>, transform_indices = @transform_4, window_bounds = array<i64: 4, 1>}, {transform_indices = @transform_5, window_bounds = array<i64: 1, 4, 256>}]} {
    %c0 = arith.constant 0 : index
    %c0_0 = arith.constant 0 : index
    %c0_1 = arith.constant 0 : index
    %0 = vector.load %arg2[%c0, %c0_0, %c0_1] : memref<1x4x256xf32, #tpu.memory_space<vmem>>, vector<1x4x256xf32>
    %1 = vector.shape_cast %0 : vector<1x4x256xf32> to vector<4x256xf32>
    %c0_2 = arith.constant 0 : index
    %c0_3 = arith.constant 0 : index
    %2 = vector.load %arg3[%c0_2, %c0_3] : memref<16x4xf32, #tpu.memory_space<vmem>>, vector<16x4xf32>
    %cst = arith.constant dense<0.000000e+00> : vector<16x256xf32>
    %3 = tpu.matmul %2, %1, %cst {dimension_numbers = #tpu.dot_dimension_numbers<[1], [0], [0], [1], [0, 0, 1, 1], [], []>} : vector<16x4xf32>, vector<4x256xf32>, vector<16x256xf32> -> vector<16x256xf32>
    %c0_4 = arith.constant 0 : index
    %c0_5 = arith.constant 0 : index
    %4 = vector.load %arg4[%c0_4, %c0_5] : memref<16x1xf32, #tpu.memory_space<vmem>>, vector<16x1xf32>
    %5 = vector.broadcast %4 : vector<16x1xf32> to vector<16x256xf32>
    %6 = arith.addf %3, %5 : vector<16x256xf32>
    %cst_6 = arith.constant 0.000000e+00 : f32
    %7 = vector.broadcast %cst_6 : f32 to vector<16x256xf32>
    %8 = arith.maximumf %6, %7 : vector<16x256xf32>
    %c0_7 = arith.constant 0 : index
    %c0_8 = arith.constant 0 : index
    %9 = vector.load %arg5[%c0_7, %c0_8] : memref<4x16xf32, #tpu.memory_space<vmem>>, vector<4x16xf32>
    %cst_9 = arith.constant dense<0.000000e+00> : vector<4x256xf32>
    %10 = tpu.matmul %9, %8, %cst_9 {dimension_numbers = #tpu.dot_dimension_numbers<[1], [0], [0], [1], [0, 0, 1, 1], [], []>} : vector<4x16xf32>, vector<16x256xf32>, vector<4x256xf32> -> vector<4x256xf32>
    %c0_10 = arith.constant 0 : index
    %c0_11 = arith.constant 0 : index
    %11 = vector.load %arg6[%c0_10, %c0_11] : memref<4x1xf32, #tpu.memory_space<vmem>>, vector<4x1xf32>
    %12 = vector.broadcast %11 : vector<4x1xf32> to vector<4x256xf32>
    %13 = arith.addf %10, %12 : vector<4x256xf32>
    %14 = arith.addf %13, %1 : vector<4x256xf32>
    %c0_12 = arith.constant 0 : index
    %c0_13 = arith.constant 0 : index
    %c0_14 = arith.constant 0 : index
    %15 = vector.load %arg7[%c0_12, %c0_13, %c0_14] : memref<1x4x256xf32, #tpu.memory_space<vmem>>, vector<1x4x256xf32>
    %16 = vector.shape_cast %15 : vector<1x4x256xf32> to vector<4x256xf32>
    %17 = vector.shape_cast %14 : vector<4x256xf32> to vector<1x4x256xf32>
    tpu.vector_store %arg7[%c0_12, %c0_13, %c0_14], %17 {strides = array<i32>} : memref<1x4x256xf32, #tpu.memory_space<vmem>>, vector<1x4x256xf32>,
    return
  }
  func.func @transform_0(%arg0: i32, %arg1: i32) -> (i32, i32, i32) {
    %c0_i32 = arith.constant 0 : i32
    %c0_i32_0 = arith.constant 0 : i32
    return %arg0, %c0_i32, %arg1 : i32, i32, i32
  }
  func.func @transform_1(%arg0: i32, %arg1: i32) -> (i32, i32) {
    %c0_i32 = arith.constant 0 : i32
    %c0_i32_0 = arith.constant 0 : i32
    %c0_i32_1 = arith.constant 0 : i32
    return %c0_i32, %c0_i32_0 : i32, i32
  }
  func.func @transform_2(%arg0: i32, %arg1: i32) -> (i32, i32) {
    %c0_i32 = arith.constant 0 : i32
    %c0_i32_0 = arith.constant 0 : i32
    %c0_i32_1 = arith.constant 0 : i32
    return %c0_i32, %c0_i32_0 : i32, i32
  }
  func.func @transform_3(%arg0: i32, %arg1: i32) -> (i32, i32) {
    %c0_i32 = arith.constant 0 : i32
    %c0_i32_0 = arith.constant 0 : i32
    %c0_i32_1 = arith.constant 0 : i32
    return %c0_i32, %c0_i32_0 : i32, i32
  }
  func.func @transform_4(%arg0: i32, %arg1: i32) -> (i32, i32) {
    %c0_i32 = arith.constant 0 : i32
    %c0_i32_0 = arith.constant 0 : i32
    %c0_i32_1 = arith.constant 0 : i32
    return %c0_i32, %c0_i32_0 : i32, i32
  }
  func.func @transform_5(%arg0: i32, %arg1: i32) -> (i32, i32, i32) {
    %c0_i32 = arith.constant 0 : i32
    %c0_i32_0 = arith.constant 0 : i32
    return %arg0, %c0_i32, %arg1 : i32, i32, i32
  }
}

</mosaic_0001>

<bundles_post_ra>
// kernel: tpu_custom_call.1
= control target key start
LH: loop header
LB: loop body
LE: loop exit
PB: predicated region body
PF: predicated region fallthrough
CT: control target
= control target key end

     0   :  { %10 = vsyncpa [#allocation3], 0  ;;  %s804_s0 = inlined_call_operand.vmem [shape: f32[2,4,256], index: 0, kind: input, shape index: {}]   ;;  %s805_s1 = inlined_call_operand.vmem [shape: f32[16,4], index: 1, kind: input, shape index: {}]   ;;  %s806_s2 = inlined_call_operand.vmem [shape: f32[16,1], index: 2, kind: input, shape index: {}]   ;;  %s807_s3 = inlined_call_operand.vmem [shape: f32[4,16], index: 3, kind: input, shape index: {}]   ;;  %s808_s4 = inlined_call_operand.vmem [shape: f32[4,1], index: 4, kind: input, shape index: {}]   ;;  %s809_s5 = inlined_call_operand.hbm [shape: f32[2,4,256], index: 5, kind: output, shape index: {}]  }
   0x1   :  { %12 = vsyncpa [#allocation3 + $0x1], 0  ;;  %s686_s18 = smov 0   ;;  %s688_s19 = smov 0  }
   0x2   :  { %s690_s20 = smov 0   ;;  %s692_s21 = smov 0  }
   0x3   :  { %s694_s22 = smov 0   ;;  %s696_s23 = smov 0  }
   0x4 LB: > { %s494_s24 = sadd.s32 4294967295, %s653_s23   ;;  %s495_s25 = sadd.s32 4294967294, %s653_s23   ;;  %s653_s23 = sphi %s696_s23, %s18_s23   ;;  %s649_s22 = sphi %s694_s22, %s816_s22   ;;  %s645_s21 = sphi %s692_s21, %s815_s21   ;;  %s641_s20 = sphi %s690_s20, %s814_s20   ;;  %s637_s19 = sphi %s688_s19, %s813_s19   ;;  %s633_s18 = sphi %s686_s18, %s812_s18  }
   0x5   : > { %s30_s26 = sadd.s32 1, %s649_s22  ;;  %s151_s27 = sadd.s32 1, %s641_s20 }
   0x6   : > { %p32_p0 = scmp.ge.s32.totalorder %s30_s26, 2  ;;  %p161_p1 = scmp.ne.s32.totalorder %s641_s20, %s637_s19 }
   0x7   : > { %p162_p2 = scmp.eq.s32.totalorder %s494_s24, 1  ;;  %p167_p3 = scmp.ne.s32.totalorder %s637_s19, %s633_s18 }
   0x8   : > { %s818_s26 = smov (%p32_p0, %s30_s26), 0  ;;  %p168_p5 = scmp.eq.s32.totalorder %s495_s25, 1 }
   0x9   : > { %p726_p4 = por %p162_p2, %p161_p1  ;;  %s146_s29 = ssub.s32 %s649_s22, %s818_s26 }
   0xa   : > { %p498_p6 = scmp.ge.s32.totalorder %s653_s23, 1  ;;  %p149_p7 = scmp.eq.s32.totalorder %s146_s29, 0 }
   0xb   : > { %p733_p8 = por %p168_p5, %p167_p3  ;;  %p211_p9 = scmp.lt.s32.totalorder %s653_s23, 3 }
   0xc   : > { %s739_s6 = scalar_select %p149_p7, %s641_s20, %s151_s27  }
   0xd   : > { %p212_p10 = pnand %p498_p6, %p211_p9 }
   0xe   : > { %p244_p11 = scmp.lt.s32.totalorder (!%p212_p10), %s645_s21, 1  ;;  %s516_s11 = sshll.u32 (!%p212_p10), %s645_s21, 3 }
   0xf   : > { %215 = sbr.rel (%p212_p10) target bundleno = 317 (0x13d), region = 40  ;;  %s413_s14 = scalar_lea.hbm (!%p212_p10), %s809_s5, %s516_s11 }
  0x10   : > { %s417_s17 = sshll.u32 (!%p212_p10), %s413_s14, 4  ;;  %s595_s7 = scalar_lea.hbm (!%p212_p10), %s809_s5, 16  ;;  %s418_s17 = int_to_ptr.hbm [resolvable:$true] %s417_s17 }
  0x11   : > { %s589_s24 = sshra.s32 (!%p212_p10), %s418_s17, 4  ;;  %s590_s24 = int_to_ptr.hbm [resolvable:$true] %s589_s24 }
  0x12   : > { %s591_s25 = scalar_lea.hbm (!%p212_p10), %s590_s24, 8  ;;  %p596_p1 = scmp.lt.s32.totalorder (!%p212_p10), %s590_s24, %s809_s5 }
  0x13   : > { %p592_p12 = scmp.ne.s32.totalorder (!%p212_p10), %s590_s24, %s591_s25  ;;  %p597_p2 = scmp.lt.s32.totalorder (!%p212_p10), %s595_s7, %s591_s25 }
  0x14   : > { %v258_v0 = vld [vmem:[%s806_s2 + $0x8] sm:$0xff]  ;;  %v655_v1 = vmov 0   ;;  %s245_s9 = scalar_select %p244_p11, %s645_s21, 1  ;;  %v257_v3 = vld [vmem:[%s806_s2] sm:$0xff]  ;;  %vm280_vm0 = vcmask 1043456   ;;  %vm273_vm1 = vcmask 31744  }
  0x15   : > { %573 = vset.pattern.permute.xlu0 %v655_v1  ;;  %574 = vset.pattern.permute.xlu1 %v655_v1  ;;  %v255_v4 = vld [vmem:[%s805_s1] sm:$0xff]  ;;  %v256_v7 = vld [vmem:[%s805_s1 + $0x8] sm:$0xff]  ;;  %vm342_vm2 = vcmask 130048   ;;  %p593_p13 = pnand %p592_p12, %p726_p4  ;;  %p598_p3 = por %p597_p2, %p596_p1 }
  0x16   : > { %266 = vperm.xlu0 %573, %v258_v0   ;;  %s515_s10 = sshll.u32 %s245_s9, 3  ;;  %v336_v8 = vld [vmem:[%s808_s4] sm:$0xf]  ;;  %s240_s9 = sand.u32 1, %s637_s19  }
  0x17   : > { %s251_s13 = scalar_lea.vmem %s804_s0, %s515_s10  ;;  %339 = vperm.xlu1 %574, %v336_v8   ;;  %v335_v23 = vld [vmem:[%s807_s3] sm:$0xf]  ;;  %s499_s10 = sshll.u32 %s240_s9, 3 }
  0x18   : > { %v254_v2 = vld [vmem:[%s251_s13] sm:$0xff]  ;;  %s242_s15 = scalar_lea.vmem [#allocation2], %s499_s10  ;;  %s400_s21 = scalar_lea.sflag [#allocation3], %s240_s9 }
  0x19   : > { %270 = vst [vmem:[#allocation1] ss:$2 sm:$0xff] %v254_v2  ;;  %s415_s16 = sshll.u32 %s242_s15, 4  ;;  %p594_p0 = pneg %p593_p13  ;;  %s416_s16 = int_to_ptr.vmem [resolvable:$true] %s415_s16 }
  0x1b   : > { %p599_p5 = pnand %p598_p3, %p594_p0 }
  0x1e   : > { %261 = vperm.xlu0 %573, %v257_v3  }
  0x20   : > { %v271_v5 = vld.sshfl [vmem:[#allocation1] sm:$0xff pattern:$0x75316420]  ;;  %v272_v6 = vld.sshfl [vmem:[#allocation1 + $0x8] sm:$0xff pattern:$0x75316420] }
  0x21   : > { %502 = vmatpush.msk.msra.mxu0 %vm280_vm0, %v271_v5  ;;  %505 = vmatpush.msk.msra.mxu1 %vm280_vm0, %v272_v6  ;;  %386 = vst [vmem:[#allocation1] ss:$2 sm:$0xff] %v254_v2 }
  0x22   : > { %503 = vmatmul.msk.f32.vlgmr.msra.gmra.mxu0 %vm273_vm1, %v255_v4  ;;  %506 = vmatmul.msk.f32.vlgmr.msra.gmra.mxu1 %vm273_vm1, %v255_v4 }
  0x28   : > { %v388_v27 = vld.sshfl [vmem:[#allocation1 + $0x8] sm:$0xff pattern:$0x75316420]  ;;  %v387_v30 = vld.sshfl [vmem:[#allocation1] sm:$0xff pattern:$0x75316420] }
  0x2a   : > { %504 = vmatmul.msk.f32.gmra.mxu0 %vm273_vm1, %v256_v7  ;;  %507 = vmatmul.msk.f32.gmra.mxu1 %vm273_vm1, %v256_v7 }
  0x88   : > { %v267_v9 = vpop.permute.xlu0 %266 }
  0x89   : > { %v340_v24 = vpop.permute.xlu1 %339 }
  0x90   : > { %v262_v12 = vpop.permute.xlu0 %261 }
  0x9f   : > { %v302_v10 = vpop.f32.mrf.mxu0  ;;  %v325_v11 = vpop.f32.mrf.mxu1 }
  0xa0   : > { %v303_v15 = vadd.f32 %v302_v10, %v262_v12  ;;  %v326_v16 = vadd.f32 %v325_v11, %v262_v12 }
  0xa2   : > { %v331_v21 = vmax.f32 %v303_v15, 0.0  ;;  %v332_v22 = vmax.f32 %v326_v16, 0.0 }
  0xa7   : > { %v305_v13 = vpop.f32.mrf.mxu0  ;;  %v328_v14 = vpop.f32.mrf.mxu1 }
  0xa8   : > { %v306_v17 = vadd.f32 %v305_v13, %v267_v9  ;;  %v329_v18 = vadd.f32 %v328_v14, %v267_v9 }
  0xaa   : > { %v333_v19 = vmax.f32 %v306_v17, 0.0  ;;  %v334_v20 = vmax.f32 %v329_v18, 0.0 }
  0xac   : > { %360 = vmatpush.msra.mxu2 %v333_v19  ;;  %380 = vmatpush.msra.mxu3 %v334_v20 }
  0xae   : > { %361 = vmatpush.msra.mxu2 %v331_v21  ;;  %381 = vmatpush.msra.mxu3 %v332_v22 }
  0xaf   : > { %508 = vmatmul.msk.f32.vlgmr.msra.gmra.mxu2 %vm342_vm2, %v335_v23  ;;  %509 = vmatmul.msk.f32.vlgmr.msra.gmra.mxu3 %vm342_vm2, %v335_v23 }
 0x132   : > { %v363_v25 = vpop.f32.mrf.mxu2  ;;  %v383_v26 = vpop.f32.mrf.mxu3 }
 0x133   : > { %v364_v28 = vadd.f32 %v363_v25, %v340_v24  ;;  %v384_v29 = vadd.f32 %v383_v26, %v340_v24 }
 0x135   : > { %v392_v31 = vadd.f32 %v388_v27, %v384_v29  ;;  %v391_v32 = vadd.f32 %v387_v30, %v364_v28 }
 0x137   : > { %v395_v33 = vrot.slane %v392_v31, 4 }
 0x139   : > { %v396_v34 = vsel %vm280_vm0, %v391_v32, %v395_v33 }
 0x13a   : > { %398 = vst [vmem:[%s242_s15] sm:$0xff] %v396_v34 }
 0x13b   : > { %602 = shalt.err (!%p599_p5)
}
 0x13c   : > { %517 = dma.vmem_to_hbm [thread:$0]  (%p726_p4), %s416_s16, 128, %s418_s17, %s400_s21  }
 0x13d PF: > { %p523_p6 = scmp.ge.s32.totalorder %s653_s23, 2  ;;  %s429_s9 = sand.u32 1, %s633_s18  }
 0x13e   : > { %s430_s11 = scalar_lea.sflag [#allocation3], %s429_s9 }
 0x13f   : > { %p520_p7 = pnand %p523_p6, %p733_p8 }
 0x141   : > { %p521_p9 = pneg %p520_p7 }
 0x143   : > { %628 = dma.done.wait (%p521_p9), %s430_s11, 128  }
 0x144   : > { %630 = vsyncadd (%p521_p9), %s430_s11, 4294967168  ;;  %s18_s23 = sadd.s32 1, %s653_s23   ;;  %s812_s18 = smov %s637_s19 }
 0x145   : > { %p15_p10 = scmp.ge.s32.totalorder %s18_s23, 4   ;;  %s813_s19 = smov %s641_s20 }
 0x146   : > { %s814_s20 = smov %s739_s6  ;;  %s815_s21 = smov %s649_s22 }
 0x147   : > { %s816_s22 = smov %s818_s26  ;;  %17 = sbr.rel (!%p15_p10) target bundleno = 4 (0x4), region = 75 }
 0x14c   :  { %436 = vsyncpa [#allocation3], 1 }
 0x14d   :  { %438 = vsyncpa [#allocation3 + $0x1], 1 }

</bundles_post_ra>
